<compile_context>
chip_gen: v7x
topology: tpu7x:2x2x1
jax: 0.10.0
libtpu: 0.0.40
codegen_flags: <defaults>
</compile_context>

<pallas_src>
import functools

import jax
import jax.numpy as jnp
from jax.experimental import pallas as pl
from jax.experimental.pallas import tpu as pltpu


# ---------------------------------------------------------------------------
# Kernel 1: CLIP contrastive loss
#   loss = 0.5 * ( CE(scale * I @ T.T, arange(B)) + CE(scale * T @ I.T, arange(B)) )
# ---------------------------------------------------------------------------
def _clip_contrastive_kernel(scale_ref, img_ref, txt_ref, out_ref):
    scale = scale_ref[0]
    img = img_ref[...]                                  # [B, D], input dtype
    txt = txt_ref[...]                                  # [B, D], input dtype

    # Fold the logit scale into the image features (B*D muls instead of B*B),
    # keeping MXU operands in the input dtype (bf16 inputs stay bf16; the
    # accumulation is f32 via preferred_element_type).
    img_s = (img.astype(jnp.float32) * scale).astype(img.dtype)

    # logits[i, j] = scale * <img_i, txt_j>; contract dim 1 of both operands so
    # no transposed copy of txt is materialized.
    logits = jax.lax.dot_general(
        img_s, txt, (((1,), (1,)), ((), ())),
        preferred_element_type=jnp.float32)             # [B, B] f32

    # Diagonal straight from the features (shared by both CE directions),
    # accumulated in f32 -- replaces O(B^2) iota/compare/select work.
    diag = jnp.sum(img_s.astype(jnp.float32) * txt.astype(jnp.float32),
                   axis=-1, keepdims=True)              # [B, 1]
    mean_diag = jnp.mean(diag)

    # image->text CE: row-wise logsumexp.
    m_r = jnp.max(logits, axis=-1, keepdims=True)
    lse_r = m_r + jnp.log(jnp.sum(jnp.exp(logits - m_r), axis=-1, keepdims=True))

    # text->image CE: logits_per_text == logits_per_image.T, so use column-wise
    # logsumexp on the SAME resident tile instead of materializing a transpose.
    m_c = jnp.max(logits, axis=0, keepdims=True)
    lse_c = m_c + jnp.log(jnp.sum(jnp.exp(logits - m_c), axis=0, keepdims=True))

    loss = 0.5 * ((jnp.mean(lse_r) - mean_diag) + (jnp.mean(lse_c) - mean_diag))
    out_ref[...] = jnp.broadcast_to(loss, (1, 1))


# ---------------------------------------------------------------------------
# Kernel 2: caption loss = CrossEntropy(logits [N, V], labels [N]) with
#           ignore_index == pad_id, mean over non-ignored tokens.
#           Tiled over tokens; emits per-tile partial sums / counts.
# ---------------------------------------------------------------------------
def _caption_ce_kernel(logits_ref, labels_ref, psum_ref, pcnt_ref, *, pad_id):
    logits = logits_ref[...].astype(jnp.float32)        # [TN, V] f32 (cast per tile)
    labels = labels_ref[...]                            # [TN, 1] int32
    tn, v = logits.shape

    m = jnp.max(logits, axis=-1, keepdims=True)
    lse = m + jnp.log(jnp.sum(jnp.exp(logits - m), axis=-1, keepdims=True))   # [TN, 1]

    # Single lane-iota reused for the whole tile; labels assumed in [0, V).
    vocab_ids = jax.lax.broadcasted_iota(jnp.int32, (tn, v), 1)
    picked = jnp.sum(jnp.where(vocab_ids == labels, logits, 0.0),
                     axis=-1, keepdims=True)                                  # [TN, 1]

    valid = (labels != pad_id).astype(jnp.float32)                            # [TN, 1]
    per_tok = (lse - picked) * valid

    # Lane-dense (1, 8, 128) partial tiles (unmasked stores); reduced in JAX.
    psum_ref[...] = jnp.broadcast_to(jnp.sum(per_tok), psum_ref.shape)
    pcnt_ref[...] = jnp.broadcast_to(jnp.sum(valid), pcnt_ref.shape)


# ---------------------------------------------------------------------------
# Wrappers
# ---------------------------------------------------------------------------
def clip_contrastive_loss(image_features, text_features, logit_scale):
    # TODO(synk): for very large contrastive batches (B*B f32 > ~32 MiB) this
    # whole-[B,B] kernel should be tiled with an online-softmax grid.
    b, d = image_features.shape
    scale_arr = jnp.asarray(logit_scale, jnp.float32).reshape((1,))
    needed = 6 * b * b * 4 + 8 * b * d * 4
    vmem_limit = int(min(max(needed, 32 * 1024 * 1024), 60 * 1024 * 1024))
    out = pl.pallas_call(
        _clip_contrastive_kernel,
        out_shape=jax.ShapeDtypeStruct((1, 1), jnp.float32),
        in_specs=[
            pl.BlockSpec(memory_space=pltpu.MemorySpace.SMEM),
            pl.BlockSpec(memory_space=pltpu.MemorySpace.VMEM),
            pl.BlockSpec(memory_space=pltpu.MemorySpace.VMEM),
        ],
        out_specs=pl.BlockSpec(memory_space=pltpu.MemorySpace.VMEM),
        compiler_params=pltpu.CompilerParams(vmem_limit_bytes=vmem_limit),
    )(scale_arr, image_features, text_features)
    return out[0, 0]


def _round_up(x, m):
    return -(-x // m) * m


def _choose_block_rows(n, v, itemsize, max_rows=256,
                       in_buf_budget=8 * 1024 * 1024):
    """Largest row-tile (multiple of 8, <= max_rows) whose double-buffered
    logits tiles fit the input-buffer budget (v7x-safe)."""
    tn = min(max_rows, _round_up(n, 8))
    tn = max(8, (tn // 8) * 8)
    while tn > 8 and 2 * tn * v * itemsize > in_buf_budget:
        tn //= 2
    return max(8, (tn // 8) * 8)


def caption_cross_entropy(logits, labels, pad_id, *, block_rows=256):
    # logits: [B, T, V] (any float dtype; read once, so bf16 halves HBM bytes)
    # labels: [B, T] int.  NOTE: matches torch CE(ignore_index=pad_id): if every
    # label equals pad_id the result is NaN; labels must lie in [0, V).
    b, t, v = logits.shape
    n = b * t
    logits2d = logits.reshape(n, v)                     # keep input dtype
    labels2d = labels.astype(jnp.int32).reshape(n, 1)

    tn = _choose_block_rows(n, v, jnp.dtype(logits.dtype).itemsize,
                            max_rows=block_rows)
    n_pad = _round_up(n, tn)
    if n_pad != n:
        # Padded rows get label == pad_id so they are ignored by the mask.
        logits2d = jnp.pad(logits2d, ((0, n_pad - n), (0, 0)))
        labels2d = jnp.pad(labels2d, ((0, n_pad - n), (0, 0)),
                           constant_values=pad_id)
    grid = n_pad // tn

    # TODO(synk): for very large vocabularies also tile V (online LSE with a
    # running max/sum) so each block is (TN, TV); full-V blocks only here.
    psum, pcnt = pl.pallas_call(
        functools.partial(_caption_ce_kernel, pad_id=pad_id),
        grid=(grid,),
        in_specs=[
            pl.BlockSpec((tn, v), lambda i: (i, 0)),
            pl.BlockSpec((tn, 1), lambda i: (i, 0)),
        ],
        out_specs=[
            pl.BlockSpec((1, 8, 128), lambda i: (i, 0, 0)),
            pl.BlockSpec((1, 8, 128), lambda i: (i, 0, 0)),
        ],
        out_shape=[
            jax.ShapeDtypeStruct((grid, 8, 128), jnp.float32),
            jax.ShapeDtypeStruct((grid, 8, 128), jnp.float32),
        ],
        compiler_params=pltpu.CompilerParams(
            dimension_semantics=("parallel",),
            vmem_limit_bytes=48 * 1024 * 1024),
    )(logits2d, labels2d)

    total = jnp.sum(psum[:, 0, 0])
    count = jnp.sum(pcnt[:, 0, 0])
    return total / count


def coca_loss(image_features, text_features, logits, labels, logit_scale,
              *, caption_loss_weight=2.0, clip_loss_weight=1.0, pad_id=0,
              caption_block_rows=256):
    """Single-device CoCaLoss.forward: returns (clip_loss, caption_loss)."""
    # TODO(synk): world_size > 1 gather_features / gather_only_features paths,
    # the 3-D multi-caption (De)CLIP branch, and Sinkhorn (unused in forward)
    # are distributed / control-flow heavy and are not implemented here.
    if clip_loss_weight:
        clip_loss = clip_loss_weight * clip_contrastive_loss(
            image_features, text_features, logit_scale)
    else:
        clip_loss = jnp.float32(0.0)
    caption_loss = caption_loss_weight * caption_cross_entropy(
        logits, labels, pad_id, block_rows=caption_block_rows)
    return clip_loss, caption_loss


# ---------------------------------------------------------------------------
# Reference (plain JAX) for a sanity check
# ---------------------------------------------------------------------------
def _ref_coca_loss(img, txt, logits, labels, scale,
                   caption_loss_weight, clip_loss_weight, pad_id):
    b = img.shape[0]
    hp = jax.lax.Precision.HIGHEST
    lpi = scale * jnp.matmul(img, txt.T, precision=hp)
    lpt = scale * jnp.matmul(txt, img.T, precision=hp)
    gt = jnp.arange(b)

    def ce(l, y):
        lse = jax.scipy.special.logsumexp(l, axis=-1)
        return jnp.mean(lse - l[jnp.arange(l.shape[0]), y])

    clip = clip_loss_weight * 0.5 * (ce(lpi, gt) + ce(lpt, gt))

    bb, t, v = logits.shape
    l2 = logits.reshape(bb * t, v).astype(jnp.float32)
    y2 = labels.reshape(bb * t)
    lse = jax.scipy.special.logsumexp(l2, axis=-1)
    per = lse - l2[jnp.arange(bb * t), y2]
    mask = (y2 != pad_id).astype(jnp.float32)
    cap = caption_loss_weight * jnp.sum(per * mask) / jnp.sum(mask)
    return clip, cap


if __name__ == "__main__":
    key = jax.random.PRNGKey(0)
    k1, k2, k3, k4 = jax.random.split(key, 4)

    B, D = 8, 32          # contrastive batch / embed dim
    T, V = 30, 512        # caption seq len / vocab size (N=240 -> multi-tile grid)
    pad_id = 0
    caption_loss_weight = 2.0
    clip_loss_weight = 1.0

    image_features = jax.random.normal(k1, (B, D), jnp.float32)
    text_features = jax.random.normal(k2, (B, D), jnp.float32)
    image_features = image_features / jnp.linalg.norm(image_features, axis=-1, keepdims=True)
    text_features = text_features / jnp.linalg.norm(text_features, axis=-1, keepdims=True)

    cap_logits = jax.random.normal(k3, (B, T, V), jnp.float32)
    cap_labels = jax.random.randint(k4, (B, T), 1, V, jnp.int32)
    cap_labels = cap_labels.at[:, -3:].set(pad_id)   # exercise ignore_index masking
    logit_scale = jnp.exp(jnp.float32(1.0))

    clip_l, cap_l = coca_loss(
        image_features, text_features, cap_logits, cap_labels, logit_scale,
        caption_loss_weight=caption_loss_weight,
        clip_loss_weight=clip_loss_weight,
        pad_id=pad_id,
        caption_block_rows=64,   # force a 4-step token grid at this small size
    )
    clip_l = jax.block_until_ready(clip_l)
    cap_l = jax.block_until_ready(cap_l)

    ref_clip, ref_cap = _ref_coca_loss(
        image_features, text_features, cap_logits, cap_labels, logit_scale,
        caption_loss_weight, clip_loss_weight, pad_id)

    assert jnp.allclose(clip_l, ref_clip, rtol=5e-3, atol=5e-3), (clip_l, ref_clip)
    assert jnp.allclose(cap_l, ref_cap, rtol=5e-3, atol=5e-3), (cap_l, ref_cap)

    print("KERNEL_OK")
</pallas_src>

<mosaic_0001>
module attributes {stable_mosaic.version = 11 : i64} {
  func.func @_clip_contrastive_kernel(%arg0: memref<1xf32, #tpu.memory_space<smem>>, %arg1: memref<8x32xf32, #tpu.memory_space<vmem>>, %arg2: memref<8x32xf32, #tpu.memory_space<vmem>>, %arg3: memref<1x1xf32, #tpu.memory_space<vmem>>) attributes {dimension_semantics = [], scalar_prefetch = 0 : i64, scratch_operands = 0 : i64, tpu.core_type = #tpu.core_type<tc>} {
    %c0 = arith.constant 0 : index
    %0 = memref.load %arg0[%c0] : memref<1xf32, #tpu.memory_space<smem>>
    %c0_0 = arith.constant 0 : index
    %c0_1 = arith.constant 0 : index
    %1 = vector.load %arg1[%c0_0, %c0_1] : memref<8x32xf32, #tpu.memory_space<vmem>>, vector<8x32xf32>
    %c0_2 = arith.constant 0 : index
    %c0_3 = arith.constant 0 : index
    %2 = vector.load %arg2[%c0_2, %c0_3] : memref<8x32xf32, #tpu.memory_space<vmem>>, vector<8x32xf32>
    %3 = vector.broadcast %0 : f32 to vector<8x32xf32>
    %4 = arith.mulf %1, %3 : vector<8x32xf32>
    %cst = arith.constant dense<0.000000e+00> : vector<8x8xf32>
    %5 = tpu.matmul %4, %2, %cst {dimension_numbers = #tpu.dot_dimension_numbers<[1], [1], [0], [0], [0, 0, 1, 0], [], []>} : vector<8x32xf32>, vector<8x32xf32>, vector<8x8xf32> -> vector<8x8xf32>
    %6 = arith.mulf %4, %2 : vector<8x32xf32>
    %cst_4 = arith.constant dense<0.000000e+00> : vector<8xf32>
    %7 = vector.multi_reduction <add>, %6, %cst_4 [1] : vector<8x32xf32> to vector<8xf32>
    %8 = vector.shape_cast %7 : vector<8xf32> to vector<8x1xf32>
    %9 = vector.shape_cast %8 : vector<8x1xf32> to vector<1x8x1xf32>
    %cst_5 = arith.constant dense<0.000000e+00> : vector<1xf32>
    %10 = vector.multi_reduction <add>, %9, %cst_5 [1, 2] : vector<1x8x1xf32> to vector<1xf32>
    %11 = vector.shape_cast %10 : vector<1xf32> to vector<1x1x1xf32>
    %12 = vector.extract %11[0, 0, 0] : f32 from vector<1x1x1xf32>
    %cst_6 = arith.constant 8.000000e+00 : f32
    %13 = arith.divf %12, %cst_6 : f32
    %cst_7 = arith.constant dense<0xFF800000> : vector<8xf32>
    %14 = vector.multi_reduction <maximumf>, %5, %cst_7 [1] : vector<8x8xf32> to vector<8xf32>
    %15 = vector.shape_cast %14 : vector<8xf32> to vector<8x1xf32>
    %16 = vector.broadcast %15 : vector<8x1xf32> to vector<8x8xf32>
    %17 = arith.subf %5, %16 : vector<8x8xf32>
    %18 = math.exp %17 : vector<8x8xf32>
    %cst_8 = arith.constant dense<0.000000e+00> : vector<8xf32>
    %19 = vector.multi_reduction <add>, %18, %cst_8 [1] : vector<8x8xf32> to vector<8xf32>
    %20 = vector.shape_cast %19 : vector<8xf32> to vector<8x1xf32>
    %21 = math.log %20 : vector<8x1xf32>
    %22 = arith.addf %15, %21 : vector<8x1xf32>
    %cst_9 = arith.constant dense<0xFF800000> : vector<8xf32>
    %23 = vector.multi_reduction <maximumf>, %5, %cst_9 [0] : vector<8x8xf32> to vector<8xf32>
    %24 = vector.shape_cast %23 : vector<8xf32> to vector<1x8xf32>
    %25 = vector.broadcast %24 : vector<1x8xf32> to vector<8x8xf32>
    %26 = arith.subf %5, %25 : vector<8x8xf32>
    %27 = math.exp %26 : vector<8x8xf32>
    %cst_10 = arith.constant dense<0.000000e+00> : vector<8xf32>
    %28 = vector.multi_reduction <add>, %27, %cst_10 [0] : vector<8x8xf32> to vector<8xf32>
    %29 = vector.shape_cast %28 : vector<8xf32> to vector<1x8xf32>
    %30 = math.log %29 : vector<1x8xf32>
    %31 = arith.addf %24, %30 : vector<1x8xf32>
    %32 = vector.shape_cast %22 : vector<8x1xf32> to vector<1x8x1xf32>
    %cst_11 = arith.constant dense<0.000000e+00> : vector<1xf32>
    %33 = vector.multi_reduction <add>, %32, %cst_11 [1, 2] : vector<1x8x1xf32> to vector<1xf32>
    %34 = vector.shape_cast %33 : vector<1xf32> to vector<1x1x1xf32>
    %35 = vector.extract %34[0, 0, 0] : f32 from vector<1x1x1xf32>
    %cst_12 = arith.constant 8.000000e+00 : f32
    %36 = arith.divf %35, %cst_12 : f32
    %37 = arith.subf %36, %13 : f32
    %38 = vector.shape_cast %31 : vector<1x8xf32> to vector<1x1x8xf32>
    %cst_13 = arith.constant dense<0.000000e+00> : vector<1xf32>
    %39 = vector.multi_reduction <add>, %38, %cst_13 [1, 2] : vector<1x1x8xf32> to vector<1xf32>
    %40 = vector.shape_cast %39 : vector<1xf32> to vector<1x1x1xf32>
    %41 = vector.extract %40[0, 0, 0] : f32 from vector<1x1x1xf32>
    %cst_14 = arith.constant 8.000000e+00 : f32
    %42 = arith.divf %41, %cst_14 : f32
    %43 = arith.subf %42, %13 : f32
    %44 = arith.addf %37, %43 : f32
    %cst_15 = arith.constant 5.000000e-01 : f32
    %45 = arith.mulf %cst_15, %44 : f32
    %46 = vector.broadcast %45 : f32 to vector<1x1xf32>
    %c0_16 = arith.constant 0 : index
    %c0_17 = arith.constant 0 : index
    %47 = vector.load %arg3[%c0_16, %c0_17] : memref<1x1xf32, #tpu.memory_space<vmem>>, vector<1x1xf32>
    tpu.vector_store %arg3[%c0_16, %c0_17], %46 {strides = array<i32>} : memref<1x1xf32, #tpu.memory_space<vmem>>, vector<1x1xf32>,
    return
  }
}

</mosaic_0001>

<bundles_post_ra>
// kernel: tpu_custom_call.1
= control target key start
LH: loop header
LB: loop body
LE: loop exit
PB: predicated region body
PF: predicated region fallthrough
CT: control target
= control target key end

     0   :  { %9 = vsyncpa [#allocation4], 0  ;;  %s391_s0 = inlined_call_operand.<no memory space> [shape: f32[1], index: 0, kind: input, shape index: {}]   ;;  %s392_s1 = inlined_call_operand.hbm [shape: f32[8,32], index: 1, kind: input, shape index: {}]   ;;  %s393_s2 = inlined_call_operand.hbm [shape: f32[8,32], index: 2, kind: input, shape index: {}]   ;;  %s394_s3 = inlined_call_operand.hbm [shape: f32[1,1], index: 3, kind: output, shape index: {}]  }
   0x1   :  { %10 = vsyncpa [#allocation7], 0 }
   0x2   :  { %11 = vsyncpa [#allocation5], 0  ;;  %s322_s12 = smov [#allocation3]   ;;  %s323_s14 = smov [#allocation6]  }
   0x3   :  { %s20_s13 = sshll.u32 %s322_s12, 4  ;;  %s30_s15 = sshll.u32 %s323_s14, 4  ;;  %s21_s13 = int_to_ptr.vmem [resolvable:$true] %s20_s13  ;;  %s31_s15 = int_to_ptr.vmem [resolvable:$true] %s30_s15 }
   0x4   :  { %s250_s18 = scalar_lea.hbm %s392_s1, 128 }
   0x5   :  { %p251_p0 = scmp.ne.s32.totalorder %s392_s1, %s250_s18  ;;  %p254_p1 = scmp.lt.u32.totalorder %s250_s18, %s392_s1 }
   0x7   :  { %p256_p2 = pnand %p254_p1, %p251_p0 }
   0x9   :  { %259 = shalt.err (!%p256_p2)
}
   0xa   :  { %s260_s23 = scalar_lea.vmem %s21_s13, 128  ;;  %p265_p4 = scmp.lt.s32.totalorder %s21_s13, %s21_s13 }
   0xb   :  { %p261_p3 = scmp.ne.s32.totalorder %s21_s13, %s260_s23  ;;  %p266_p5 = scmp.lt.s32.totalorder %s260_s23, %s260_s23 }
   0xd   :  { %p267_p6 = por %p266_p5, %p265_p4 }
   0xf   :  { %p268_p7 = pnand %p267_p6, %p261_p3 }
  0x11   :  { %271 = shalt.err (!%p268_p7)
}
  0x12   :  { %23 = dma.hbm_to_vmem [thread:$0]  %s392_s1, 128, %s21_s13, [#allocation4]  }
  0x13   :  { %s272_s28 = scalar_lea.hbm %s393_s2, 128 }
  0x14   :  { %p273_p8 = scmp.ne.s32.totalorder %s393_s2, %s272_s28  ;;  %p276_p9 = scmp.lt.u32.totalorder %s272_s28, %s393_s2 }
  0x16   :  { %p278_p10 = pnand %p276_p9, %p273_p8 }
  0x18   :  { %281 = shalt.err (!%p278_p10)
}
  0x19   :  { %s282_s6 = scalar_lea.vmem %s31_s15, 128  ;;  %p287_p12 = scmp.lt.s32.totalorder %s31_s15, %s31_s15 }
  0x1a   :  { %p283_p11 = scmp.ne.s32.totalorder %s31_s15, %s282_s6  ;;  %p288_p13 = scmp.lt.s32.totalorder %s282_s6, %s282_s6 }
  0x1c   :  { %p289_p0 = por %p288_p13, %p287_p12 }
  0x1e   :  { %p290_p1 = pnand %p289_p0, %p283_p11 }
  0x20   :  { %293 = shalt.err (!%p290_p1)
}
  0x21   :  { %33 = dma.hbm_to_vmem [thread:$0]  %s393_s2, 128, %s31_s15, [#allocation7]  }
  0x22   :  { %316 = dma.done.wait [#allocation4], 128  }
  0x23   :  { %317 = vsyncadd [#allocation4], 4294967168 }
  0x24   :  { %318 = dma.done.wait [#allocation7], 128  }
  0x25   :  { %319 = vsyncadd [#allocation7], 4294967168  ;;  %v324_v0 = vmov 0.0   ;;  %vm325_vm0 = vmmov 0   ;;  %vm45_vm1 = vcmask 261120   ;;  %v43_v1 = vstv %s391_s0  ;;  %v42_v2 = vld [vmem:[#allocation6] sm:$0xff] }
  0x26   :  { %226 = vmatprep.subr.mxu0 %v324_v0  ;;  %228 = vmatprep.mubr.msk.f32.mxu0 %vm325_vm0, %v324_v0  ;;  %v41_v3 = vld [vmem:[#allocation3] sm:$0xff]  ;;  %vm126_vm2 = vcmask 7168   ;;  %vm140_vm3 = vcmask 64512   ;;  %vm186_vm4 = vcmask 57344   ;;  %s326_s17 = smov [#allocation8]   ;;  %vm204_vm5 = vcmask 0  }
  0x27   :  { %227 = vmatpush3.xpose.msk.msra.mxu0 %vm45_vm1, %v42_v2  ;;  %v44_v4 = vmul.f32 %v43_v1, %v41_v3  ;;  %s212_s18 = sshll.u32 %s326_s17, 4  ;;  %s213_s18 = int_to_ptr.vmem [resolvable:$true] %s212_s18 }
  0x28   :  { %s294_s20 = scalar_lea.vmem %s213_s18, 16  ;;  %s298_s21 = scalar_lea.vmem %s213_s18, 32 }
  0x29   :  { %v122_v5 = vmul.f32 %v44_v4, %v42_v2  ;;  %p295_p2 = scmp.ne.s32.totalorder %s213_s18, %s294_s20  ;;  %p299_p3 = scmp.lt.s32.totalorder %s213_s18, %s213_s18 }
  0x2a   :  { %229 = vmatmul.mubr.msk.f32.vlgmr.msra.gmra.mrb[0].mxu0 %vm45_vm1, %v44_v4  ;;  %p300_p4 = scmp.lt.s32.totalorder %s298_s21, %s294_s20 }
  0x2b   :  { %v123_v6 = vsel %vm45_vm1, %v122_v5, 0.0 }
  0x2c   :  { %124 = vadd.xlane.f32.xlu1 %v123_v6  ;;  %p301_p5 = por %p300_p4, %p299_p3 }
  0x2e   :  { %p302_p6 = pnand %p301_p5, %p295_p2 }
  0xb9   :  { %v125_v7 = vpop.xlane.xlu1 %124 }
  0xba   :  { %v127_v8 = vsel %vm126_vm2, %v125_v7, 0.0 }
  0xbb   :  { %128 = vadd.xlane.f32.xlu1 %v127_v8 }
  0xfd   :  { %v118_v9 = vpop.f32.mrb[0].mxu0 }
  0xfe   :  { %v230_v10 = vpop.f32.mrb[1].mxu0  ;;  %v141_v11 = vsel %vm140_vm3, %v118_v9, -inf }
  0xff   :  { %142 = vmax.xlane.f32.xlu0 %v141_v11  ;;  %v153_v12 = vrot.slane %v141_v11, 4 }
 0x101   :  { %v154_v13 = vmax.f32 %v141_v11, %v153_v12 }
 0x103   :  { %v155_v14 = vrot.slane %v154_v13, 2 }
 0x105   :  { %v156_v15 = vmax.f32 %v154_v13, %v155_v14 }
 0x107   :  { %v157_v16 = vrot.slane %v156_v15, 1 }
 0x109   :  { %v158_v17 = vmax.f32 %v156_v15, %v157_v16 }
 0x10b   :  { %v159_v18 = vsub.f32 %v118_v9, %v158_v17 }
 0x10d   :  { %v160_v19 = vmul.f32 1.442695, %v159_v18 }
 0x10f   :  { %242 = vpow2.f32 %v160_v19 }
 0x119   :  { %v243_v20 = vpop.eup %242 }
 0x11a   :  { %v162_v21 = vsel %vm140_vm3, %v243_v20, 0.0 }
 0x11b   :  { %v163_v22 = vrot.slane %v162_v21, 4 }
 0x11d   :  { %v164_v23 = vadd.f32 %v163_v22, %v162_v21 }
 0x11f   :  { %v165_v24 = vrot.slane %v164_v23, 2 }
 0x121   :  { %v166_v25 = vadd.f32 %v165_v24, %v164_v23 }
 0x123   :  { %v167_v26 = vrot.slane %v166_v25, 1 }
 0x125   :  { %v168_v27 = vadd.f32 %v167_v26, %v166_v25 }
 0x127   :  { %244 = vlog2.f32 %v168_v27 }
 0x131   :  { %v245_v28 = vpop.eup %244 }
 0x132   :  { %v170_v29 = vmul.f32 0.6931472, %v245_v28 }
 0x134   :  { %v171_v30 = vadd.f32 %v170_v29, %v158_v17 }
 0x136   :  { %v187_v31 = vsel %vm186_vm4, %v171_v30, 0.0 }
 0x137   :  { %188 = vadd.xlane.f32.xlu1 %v187_v31 }
 0x148   :  { %v129_v40 = vpop.xlane.xlu1 %128 }
 0x149   :  { %v130_v42 = vrot.slane %v129_v40, 4 }
 0x14b   :  { %v131_v44 = vadd.f32 %v130_v42, %v129_v40 }
 0x14d   :  { %v132_v45 = vrot.slane %v131_v44, 2 }
 0x14f   :  { %v133_v46 = vadd.f32 %v132_v45, %v131_v44 }
 0x151   :  { %v134_v47 = vrot.slane %v133_v46, 1 }
 0x153   :  { %v135_v48 = vadd.f32 %v134_v47, %v133_v46 }
 0x155   :  { %231 = vpush %v135_v48 }
 0x186   :  { %s232_s0 = spop %231 }
 0x187   :  { %s139_s2 = smul.f32 0.125, %s232_s0 }
 0x18c   :  { %v143_v32 = vpop.xlane.xlu0 %142 }
 0x18d   :  { %v144_v33 = vsub.f32 %v118_v9, %v143_v32 }
 0x18f   :  { %v145_v34 = vmul.f32 1.442695, %v144_v33 }
 0x191   :  { %246 = vpow2.f32 %v145_v34 }
 0x19b   :  { %v247_v35 = vpop.eup %246 }
 0x19c   :  { %v147_v36 = vsel %vm140_vm3, %v247_v35, 0.0 }
 0x19d   :  { %148 = vadd.xlane.f32.xlu0 %v147_v36 }
 0x1c4   :  { %v189_v49 = vpop.xlane.xlu1 %188 }
 0x1c5   :  { %v190_v50 = vrot.slane %v189_v49, 4 }
 0x1c7   :  { %v191_v51 = vadd.f32 %v190_v50, %v189_v49 }
 0x1c9   :  { %v192_v52 = vrot.slane %v191_v51, 2 }
 0x1cb   :  { %v193_v56 = vadd.f32 %v192_v52, %v191_v51 }
 0x1cd   :  { %v194_v59 = vrot.slane %v193_v56, 1 }
 0x1cf   :  { %v195_v62 = vadd.f32 %v194_v59, %v193_v56 }
 0x22a   :  { %v149_v37 = vpop.xlane.xlu0 %148 }
 0x22b   :  { %248 = vlog2.f32 %v149_v37 }
 0x235   :  { %v249_v38 = vpop.eup %248 }
 0x236   :  { %v151_v39 = vmul.f32 0.6931472, %v249_v38 }
 0x238   :  { %v152_v41 = vadd.f32 %v151_v39, %v143_v32 }
 0x23a   :  { %v172_v43 = vsel %vm126_vm2, %v152_v41, 0.0 }
 0x23b   :  { %173 = vadd.xlane.f32.xlu0 %v172_v43 }
 0x2c8   :  { %v174_v53 = vpop.xlane.xlu0 %173 }
 0x2c9   :  { %v175_v54 = vrot.slane %v174_v53, 4 }
 0x2cb   :  { %v176_v55 = vadd.f32 %v175_v54, %v174_v53 }
 0x2cd   :  { %v177_v57 = vrot.slane %v176_v55, 2 }
 0x2cf   :  { %v178_v58 = vadd.f32 %v177_v57, %v176_v55 }
 0x2d1   :  { %v179_v60 = vrot.slane %v178_v58, 1 }
 0x2d3   :  { %v180_v61 = vadd.f32 %v179_v60, %v178_v58 }
 0x2d5   :  { %233 = vpush %v180_v61 }
 0x2d6   :  { %235 = vpush %v195_v62 }
 0x306   :  { %s234_s10 = spop %233 }
 0x307   :  { %s184_s11 = smul.f32 0.125, %s234_s10  ;;  %s236_s12 = spop %235 }
 0x308   :  { %s199_s13 = smul.f32 0.125, %s236_s12 }
 0x309   :  { %s185_s14 = ssub.f32 %s184_s11, %s139_s2 }
 0x30a   :  { %s200_s15 = ssub.f32 %s199_s13, %s139_s2 }
 0x30c   :  { %s201_s16 = sadd.f32 %s200_s15, %s185_s14 }
 0x30e   :  { %s202_s19 = smul.f32 0.5, %s201_s16 }
 0x310   :  { %v203_v63 = vstv %s202_s19 }
 0x311   :  { %205 = vst.msk [vmem:[#allocation8] sm:$0x1] %vm204_vm5, %v203_v63 }
 0x312   :  { %305 = shalt.err (!%p302_p6)
}
 0x313   :  { %s306_s24 = scalar_lea.hbm %s394_s3, 16 }
 0x314   :  { %p307_p7 = scmp.ne.s32.totalorder %s394_s3, %s306_s24  ;;  %p310_p8 = scmp.lt.u32.totalorder %s306_s24, %s394_s3 }
 0x316   :  { %p312_p9 = pnand %p310_p8, %p307_p7 }
 0x318   :  { %315 = shalt.err (!%p312_p9)
}
 0x319   :  { %215 = dma.vmem_to_hbm [thread:$0]  %s213_s18, 16, %s394_s3, [#allocation5]  }
 0x31a   :  { %320 = dma.done.wait [#allocation5], 16  }
 0x31b   :  { %321 = vsyncadd [#allocation5], 4294967280 }
 0x31c   :  { %219 = vsyncpa [#allocation4], 1 }
 0x31d   :  { %220 = vsyncpa [#allocation7], 1 }
 0x31e   :  { %221 = vsyncpa [#allocation5], 1 }

</bundles_post_ra>
